<compile_context>
chip_gen: v7x
topology: tpu7x:2x2x1
jax: 0.10.0
libtpu: 0.0.40
codegen_flags: <defaults>
</compile_context>

<pallas_src>
import numpy as np
import jax
import jax.numpy as jnp
from jax import lax
from jax.experimental import pallas as pl
from jax.experimental.pallas import tpu as pltpu

# ----------------------------- config (small, TPU-aligned) -----------------------------
EMBED_DIM = 128
N_ENTITY = 128
N_RELATION = 16
N_WORD = 32
BATCH = 8
SEQ = 8
DROPOUT = 0.5
REG_WEIGHT = 1e-5

_LOG_EPS = float(np.log(np.float32(1e-10)))  # lower bound of log(clamp(sm, 1e-10, 1.0))


def _round_up(x, m):
    return (x + m - 1) // m * m


# ----------------------------------- Pallas kernel -------------------------------------
def taproje_loss_kernel(x_ref, ent_ref, des_ref, gate_ref, neg_ref, out_ref,
                        m_ref, s_ref, acc_ref, npos_ref, cache_ref):
    """Fused gated-combine + score matmul + mask_softmax cross-entropy.

    Grid = (2 passes, N_pad // TILE_N entity tiles); both axes sequential ("arbitrary").
      pass 0: stream entity tiles, compute scores (cached to VMEM), accumulate per-row
              running max / sum-exp of the masked scores and the positive-label counts.
      pass 1: re-read only the cached scores + neg tiles, accumulate the clipped positive
              log-prob mass with the now-final (max, log-sum-exp); finalize on the last
              tile.  Tables are NOT re-streamed in pass 1 (index_map pins to the last
              block) and the combine/matmul is skipped.

    x_ref    : (2B, D)           resident -- [tr ; hr] stacked, compute_dtype
    ent_ref  : (TILE_N, D)       streamed -- entity_embedding.weight tile
    des_ref  : (TILE_N, D)       streamed -- NBOW description embedding tile
    gate_ref : (TILE_N, D)       streamed -- gate.weight tile
    neg_ref  : (2B, TILE_N)      streamed -- [neg_sample_h ; neg_sample_t] tile (f32)
    out_ref  : (1, 1) SMEM                -- loss_trh + loss_hrt
    cache_ref: (NT, 2B, TILE_N)  scratch  -- pass-0 score cache (f32)
    """
    p = pl.program_id(0)
    j = pl.program_id(1)
    last_j = pl.num_programs(1) - 1

    @pl.when((p == 0) & (j == 0))
    def _init():
        m_ref[...] = jnp.full(m_ref.shape, -jnp.inf, dtype=jnp.float32)
        s_ref[...] = jnp.zeros(s_ref.shape, dtype=jnp.float32)
        acc_ref[...] = jnp.zeros(acc_ref.shape, dtype=jnp.float32)
        npos_ref[...] = jnp.zeros(npos_ref.shape, dtype=jnp.float32)

    neg = neg_ref[...].astype(jnp.float32)

    @pl.when(p == 0)
    def _pass0():
        # Gated entity/description combine, natural (TILE_N, D) layout.
        g = pl.reciprocal(1.0 + jnp.exp(-gate_ref[...].astype(jnp.float32)),
                          approx=False)                                   # sigmoid(gate)
        ed = (g * ent_ref[...].astype(jnp.float32)
              + (1.0 - g) * des_ref[...].astype(jnp.float32)).astype(x_ref.dtype)

        # (2B, D) x (TILE_N, D)^T via dot_general contracting dim 1 of both (MXU-native).
        scores = lax.dot_general(x_ref[...], ed, (((1,), (1,)), ((), ())),
                                 preferred_element_type=jnp.float32)      # (2B, TILE_N)
        cache_ref[j] = scores

        w = jnp.abs(neg)
        m_tile = jnp.max(w * scores, axis=1, keepdims=True)
        m_new = jnp.maximum(m_ref[...], m_tile)
        alpha = jnp.exp(m_ref[...] - m_new)
        s_ref[...] = s_ref[...] * alpha + jnp.sum(
            jnp.exp(scores - m_new) * w, axis=1, keepdims=True)
        m_ref[...] = m_new
        npos_ref[...] += jnp.sum(jnp.maximum(neg, 0.0), axis=1, keepdims=True)

    @pl.when(p == 1)
    def _pass1():
        scores = cache_ref[j]                                 # cached f32 scores, no DMA
        y = jnp.maximum(neg, 0.0)
        # For positive (w == 1) labels:
        #   log(clamp(exp(score - m) / s, 1e-10, 1)) == clamp(score - m - log(s), log(1e-10), 0)
        c = m_ref[...] + jnp.log(s_ref[...])                  # (2B, 1)
        logp = jnp.clip(scores - c, _LOG_EPS, 0.0)
        acc_ref[...] += jnp.sum(logp * y, axis=1, keepdims=True)

    @pl.when((p == 1) & (j == last_j))
    def _finalize():
        # Guard rows with zero positives (padded rows / degenerate labels) -> 0, not NaN.
        inv_npos = pl.reciprocal(jnp.maximum(npos_ref[...], 1.0), approx=False)
        out_ref[0, 0] = -jnp.sum(acc_ref[...] * inv_npos)


def taproje_loss_pallas(x, ent, des, gate, neg, *, tile_n=None,
                        compute_dtype=jnp.bfloat16,
                        vmem_limit_bytes=48 * 1024 * 1024):
    """x: (2B, D); ent/des/gate: (N, D) natural layout; neg: (2B, N) -> scalar loss (f32)."""
    rows, d = x.shape
    n = ent.shape[0]

    # Row (sublane) padding: padded rows have neg == 0 -> guarded to zero contribution.
    rows_pad = _round_up(rows, 8)

    # Entity tile: big tiles per perf review (per-step overhead ~0.35us); lane-aligned.
    itemsize = jnp.dtype(compute_dtype).itemsize
    if tile_n is None:
        cap = 4096 if itemsize <= 2 else 2048
        tile_n = min(cap, _round_up(n, 128))
    tile_n = _round_up(tile_n, 128)
    n_pad = _round_up(n, tile_n)
    nt = n_pad // tile_n

    # Pad + cast.  Padded entity columns get neg == 0, so w = 0 and y = 0: they add
    # nothing to the running max / sum-exp / npos / loss.
    x_p = jnp.pad(x, ((0, rows_pad - rows), (0, 0))).astype(compute_dtype)
    ent_p = jnp.pad(ent, ((0, n_pad - n), (0, 0))).astype(compute_dtype)
    des_p = jnp.pad(des, ((0, n_pad - n), (0, 0))).astype(compute_dtype)
    gate_p = jnp.pad(gate, ((0, n_pad - n), (0, 0))).astype(compute_dtype)
    neg_p = jnp.pad(neg, ((0, rows_pad - rows), (0, n_pad - n))).astype(jnp.float32)

    # During pass 1 the table index_map pins to the last block -> no re-DMA of the tables.
    def table_map(p, j):
        return (j * (1 - p) + (nt - 1) * p, 0)

    table_spec = pl.BlockSpec((tile_n, d), table_map)

    grid_spec = pltpu.PrefetchScalarGridSpec(
        num_scalar_prefetch=0,
        grid=(2, nt),                                              # (pass, entity tile)
        in_specs=[
            pl.BlockSpec((rows_pad, d), lambda p, j: (0, 0)),      # x resident
            table_spec,                                            # entity (N, D)
            table_spec,                                            # description (N, D)
            table_spec,                                            # gate (N, D)
            pl.BlockSpec((rows_pad, tile_n), lambda p, j: (0, j)),  # stacked labels
        ],
        out_specs=pl.BlockSpec(memory_space=pltpu.MemorySpace.SMEM),
        scratch_shapes=[pltpu.VMEM((rows_pad, 1), jnp.float32)] * 4   # m, s, acc, n_pos
                      + [pltpu.VMEM((nt, rows_pad, tile_n), jnp.float32)],  # score cache
    )

    out = pl.pallas_call(
        taproje_loss_kernel,
        out_shape=jax.ShapeDtypeStruct((1, 1), jnp.float32),
        grid_spec=grid_spec,
        compiler_params=pltpu.CompilerParams(
            dimension_semantics=("arbitrary", "arbitrary"),
            vmem_limit_bytes=vmem_limit_bytes),
    )(x_p, ent_p, des_p, gate_p, neg_p)
    return out[0, 0]


# ---------------------------- deterministic parameter init -----------------------------
def init_params():
    bound = 6.0 / np.sqrt(N_ENTITY)
    p = {
        "entity": np.random.RandomState(123).uniform(-bound, bound,
                                                     (N_ENTITY, EMBED_DIM)),
        "relation": np.random.RandomState(456).uniform(-bound, bound,
                                                       (N_RELATION, EMBED_DIM)),
        "word": np.random.RandomState(122).uniform(-bound, bound,
                                                   (N_WORD + 1, EMBED_DIM)),
        "gate": np.random.RandomState(234).uniform(-0.1, 0.1,
                                                   (N_ENTITY, EMBED_DIM)),
        "weight_t": np.random.RandomState(501).uniform(-bound, bound, EMBED_DIM),
        "weight_tr": np.random.RandomState(502).uniform(-bound, bound, EMBED_DIM),
        "weight_bias_t": np.zeros(EMBED_DIM),
        "weight_h": np.random.RandomState(501).uniform(-bound, bound, EMBED_DIM),
        "weight_hr": np.random.RandomState(502).uniform(-bound, bound, EMBED_DIM),
        "weight_bias_h": np.zeros(EMBED_DIM),
    }
    return {k: jnp.asarray(v, dtype=jnp.float32) for k, v in p.items()}


# --------------------------------------- glue -------------------------------------------
def nbow(word_emb, idx):
    # NBOW encoder: embedding lookup then sum over sequence axis.
    return jnp.sum(jnp.take(word_emb, idx, axis=0), axis=1)


def taproje_forward(params, triple, hd, td, neg_sample_h, neg_sample_t, des_list,
                    dropout_key):
    h = jnp.take(params["entity"], triple[:, 0], axis=0)
    t = jnp.take(params["entity"], triple[:, 1], axis=0)
    r = jnp.take(params["relation"], triple[:, 2], axis=0)
    hd_e = nbow(params["word"], hd)
    td_e = nbow(params["word"], td)

    # combine_methods == 'gate'
    gate_h = jax.nn.sigmoid(jnp.take(params["gate"], triple[:, 0], axis=0))
    gate_t = jax.nn.sigmoid(jnp.take(params["gate"], triple[:, 1], axis=0))
    h = gate_h * h + (1.0 - gate_h) * hd_e
    t = gate_t * t + (1.0 - gate_t) * td_e
    w_reg = jnp.sum(jnp.abs(params["gate"]))

    des_emb = nbow(params["word"], des_list)          # (N_ENTITY, D), natural layout

    def dropout(x, key):
        # TODO(synk): PyTorch F.dropout RNG stream is not reproducible; a fixed JAX key is used.
        keep = jax.random.bernoulli(key, 1.0 - DROPOUT, x.shape)
        return jnp.where(keep, x / (1.0 - DROPOUT), 0.0)

    k1, k2 = jax.random.split(dropout_key)
    tr = params["weight_t"] * t + params["weight_tr"] * r
    tr = dropout(jnp.tanh(tr + params["weight_bias_t"]), k1)
    hr = params["weight_h"] * h + params["weight_hr"] * r
    hr = dropout(jnp.tanh(hr + params["weight_bias_h"]), k2)

    # Fuse the two loss paths: stack LHS rows and the matching label matrices.
    x = jnp.concatenate([tr, hr], axis=0)                            # (2B, D)
    neg = jnp.concatenate([neg_sample_h, neg_sample_t], axis=0)      # (2B, N)

    # Tables stay in natural (N, D) layout (no host-side transposes); the kernel
    # contracts with A @ B^T via dot_general (MXU-native).
    main_loss = taproje_loss_pallas(
        x, params["entity"], des_emb, params["gate"], neg,
        compute_dtype=jnp.bfloat16)   # set jnp.float32 for exact reference numerics

    regularizer = (jnp.sum(jnp.abs(params["entity"]))
                   + jnp.sum(jnp.abs(params["relation"]))
                   + jnp.sum(jnp.abs(params["word"]))
                   + w_reg
                   + jnp.sum(jnp.abs(params["weight_t"]))
                   + jnp.sum(jnp.abs(params["weight_tr"]))
                   + jnp.sum(jnp.abs(params["weight_h"]))
                   + jnp.sum(jnp.abs(params["weight_hr"])))
    return main_loss + REG_WEIGHT * regularizer


# --------------------------------------- main -------------------------------------------
if __name__ == "__main__":
    params = init_params()
    key = jax.random.PRNGKey(0)
    k_tri, k_hd, k_td, k_des, k_nh, k_nt, k_drop = jax.random.split(key, 7)

    triple = jnp.stack([
        jax.random.randint(k_tri, (BATCH,), 0, N_ENTITY),
        jax.random.randint(jax.random.fold_in(k_tri, 1), (BATCH,), 0, N_ENTITY),
        jax.random.randint(jax.random.fold_in(k_tri, 2), (BATCH,), 0, N_RELATION),
    ], axis=1).astype(jnp.int32)

    hd = jax.random.randint(k_hd, (BATCH, SEQ), 0, N_WORD + 1, dtype=jnp.int32)
    td = jax.random.randint(k_td, (BATCH, SEQ), 0, N_WORD + 1, dtype=jnp.int32)
    des_list = jax.random.randint(k_des, (N_ENTITY, SEQ), 0, N_WORD + 1, dtype=jnp.int32)

    # negative-sampling label matrices in {-1, 0, 1}; guarantee >=1 positive per row
    neg_h = jax.random.randint(k_nh, (BATCH, N_ENTITY), -1, 2).astype(jnp.float32)
    neg_t = jax.random.randint(k_nt, (BATCH, N_ENTITY), -1, 2).astype(jnp.float32)
    neg_h = neg_h.at[:, 0].set(1.0)
    neg_t = neg_t.at[:, 0].set(1.0)

    loss = taproje_forward(params, triple, hd, td, neg_h, neg_t, des_list, k_drop)
    loss = jax.block_until_ready(loss)
    assert np.isfinite(float(loss)), "loss is not finite"
    print("KERNEL_OK")
</pallas_src>

<mosaic_0001>
module attributes {stable_mosaic.version = 11 : i64} {
  func.func @taproje_loss_kernel(%arg0: i32, %arg1: i32, %arg2: memref<16x128xbf16, #tpu.memory_space<vmem>>, %arg3: memref<128x128xbf16, #tpu.memory_space<vmem>>, %arg4: memref<128x128xbf16, #tpu.memory_space<vmem>>, %arg5: memref<128x128xbf16, #tpu.memory_space<vmem>>, %arg6: memref<16x128xf32, #tpu.memory_space<vmem>>, %arg7: memref<1x1xf32, #tpu.memory_space<smem>>, %arg8: memref<16x1xf32, #tpu.memory_space<vmem>>, %arg9: memref<16x1xf32, #tpu.memory_space<vmem>>, %arg10: memref<16x1xf32, #tpu.memory_space<vmem>>, %arg11: memref<16x1xf32, #tpu.memory_space<vmem>>, %arg12: memref<1x16x128xf32, #tpu.memory_space<vmem>>) attributes {dimension_semantics = [#tpu.dimension_semantics<arbitrary>, #tpu.dimension_semantics<arbitrary>], iteration_bounds = array<i64: 2, 1>, scalar_prefetch = 0 : i64, scratch_operands = 5 : i64, tpu.core_type = #tpu.core_type<tc>, window_params = [{pipeline_mode = #tpu.pipeline_mode<synchronous>, transform_indices = @transform_0, window_bounds = array<i64: 16, 128>}, {transform_indices = @transform_1, window_bounds = array<i64: 128, 128>}, {transform_indices = @transform_2, window_bounds = array<i64: 128, 128>}, {transform_indices = @transform_3, window_bounds = array<i64: 128, 128>}, {transform_indices = @transform_4, window_bounds = array<i64: 16, 128>}, {transform_indices = @transform_5, window_bounds = array<i64: 1, 1>}]} {
    %c0_i32 = arith.constant 0 : i32
    %0 = arith.cmpi eq, %arg0, %c0_i32 : i32
    %c0_i32_0 = arith.constant 0 : i32
    %1 = arith.cmpi eq, %arg1, %c0_i32_0 : i32
    %2 = arith.andi %0, %1 : i1
    %3 = arith.extui %2 : i1 to i32
    %c0_i32_1 = arith.constant 0 : i32
    %4 = arith.cmpi ne, %3, %c0_i32_1 : i32
    scf.if %4 {
      %cst = arith.constant 0xFF800000 : f32
      %17 = vector.broadcast %cst : f32 to vector<16x1xf32>
      %c0_9 = arith.constant 0 : index
      %c0_10 = arith.constant 0 : index
      %18 = vector.load %arg8[%c0_9, %c0_10] : memref<16x1xf32, #tpu.memory_space<vmem>>, vector<16x1xf32>
      tpu.vector_store %arg8[%c0_9, %c0_10], %17 {strides = array<i32>} : memref<16x1xf32, #tpu.memory_space<vmem>>, vector<16x1xf32>,
      %cst_11 = arith.constant 0.000000e+00 : f32
      %19 = vector.broadcast %cst_11 : f32 to vector<16x1xf32>
      %c0_12 = arith.constant 0 : index
      %c0_13 = arith.constant 0 : index
      %20 = vector.load %arg9[%c0_12, %c0_13] : memref<16x1xf32, #tpu.memory_space<vmem>>, vector<16x1xf32>
      tpu.vector_store %arg9[%c0_12, %c0_13], %19 {strides = array<i32>} : memref<16x1xf32, #tpu.memory_space<vmem>>, vector<16x1xf32>,
      %cst_14 = arith.constant 0.000000e+00 : f32
      %21 = vector.broadcast %cst_14 : f32 to vector<16x1xf32>
      %c0_15 = arith.constant 0 : index
      %c0_16 = arith.constant 0 : index
      %22 = vector.load %arg10[%c0_15, %c0_16] : memref<16x1xf32, #tpu.memory_space<vmem>>, vector<16x1xf32>
      tpu.vector_store %arg10[%c0_15, %c0_16], %21 {strides = array<i32>} : memref<16x1xf32, #tpu.memory_space<vmem>>, vector<16x1xf32>,
      %cst_17 = arith.constant 0.000000e+00 : f32
      %23 = vector.broadcast %cst_17 : f32 to vector<16x1xf32>
      %c0_18 = arith.constant 0 : index
      %c0_19 = arith.constant 0 : index
      %24 = vector.load %arg11[%c0_18, %c0_19] : memref<16x1xf32, #tpu.memory_space<vmem>>, vector<16x1xf32>
      tpu.vector_store %arg11[%c0_18, %c0_19], %23 {strides = array<i32>} : memref<16x1xf32, #tpu.memory_space<vmem>>, vector<16x1xf32>,
    } else {
    }
    %c0 = arith.constant 0 : index
    %c0_2 = arith.constant 0 : index
    %5 = vector.load %arg6[%c0, %c0_2] : memref<16x128xf32, #tpu.memory_space<vmem>>, vector<16x128xf32>
    %c0_i32_3 = arith.constant 0 : i32
    %6 = arith.cmpi eq, %arg0, %c0_i32_3 : i32
    %7 = arith.extui %6 : i1 to i32
    %c0_i32_4 = arith.constant 0 : i32
    %8 = arith.cmpi ne, %7, %c0_i32_4 : i32
    scf.if %8 {
      %c0_9 = arith.constant 0 : index
      %c0_10 = arith.constant 0 : index
      %17 = vector.load %arg5[%c0_9, %c0_10] : memref<128x128xbf16, #tpu.memory_space<vmem>>, vector<128x128xbf16>
      %18 = arith.extf %17 : vector<128x128xbf16> to vector<128x128xf32>
      %cst = arith.constant 0.000000e+00 : f32
      %19 = vector.broadcast %cst : f32 to vector<128x128xf32>
      %20 = arith.subf %19, %18 : vector<128x128xf32>
      %21 = math.exp %20 : vector<128x128xf32>
      %cst_11 = arith.constant 1.000000e+00 : f32
      %22 = vector.broadcast %cst_11 : f32 to vector<128x128xf32>
      %23 = arith.addf %22, %21 : vector<128x128xf32>
      %24 = tpu.reciprocal %23 : vector<128x128xf32> -> vector<128x128xf32>
      %c0_12 = arith.constant 0 : index
      %c0_13 = arith.constant 0 : index
      %25 = vector.load %arg3[%c0_12, %c0_13] : memref<128x128xbf16, #tpu.memory_space<vmem>>, vector<128x128xbf16>
      %26 = arith.extf %25 : vector<128x128xbf16> to vector<128x128xf32>
      %27 = arith.mulf %24, %26 : vector<128x128xf32>
      %cst_14 = arith.constant 1.000000e+00 : f32
      %28 = vector.broadcast %cst_14 : f32 to vector<128x128xf32>
      %29 = arith.subf %28, %24 : vector<128x128xf32>
      %c0_15 = arith.constant 0 : index
      %c0_16 = arith.constant 0 : index
      %30 = vector.load %arg4[%c0_15, %c0_16] : memref<128x128xbf16, #tpu.memory_space<vmem>>, vector<128x128xbf16>
      %31 = arith.extf %30 : vector<128x128xbf16> to vector<128x128xf32>
      %32 = arith.mulf %29, %31 : vector<128x128xf32>
      %33 = arith.addf %27, %32 : vector<128x128xf32>
      %34 = arith.truncf %33 : vector<128x128xf32> to vector<128x128xbf16>
      %c0_17 = arith.constant 0 : index
      %c0_18 = arith.constant 0 : index
      %35 = vector.load %arg2[%c0_17, %c0_18] : memref<16x128xbf16, #tpu.memory_space<vmem>>, vector<16x128xbf16>
      %cst_19 = arith.constant dense<0.000000e+00> : vector<16x128xf32>
      %36 = tpu.matmul %35, %34, %cst_19 {dimension_numbers = #tpu.dot_dimension_numbers<[1], [1], [0], [0], [0, 0, 1, 0], [], []>} : vector<16x128xbf16>, vector<128x128xbf16>, vector<16x128xf32> -> vector<16x128xf32>
      %37 = arith.index_cast %arg1 : i32 to index
      %c0_20 = arith.constant 0 : index
      %c0_21 = arith.constant 0 : index
      %38 = vector.load %arg12[%37, %c0_20, %c0_21] : memref<1x16x128xf32, #tpu.memory_space<vmem>>, vector<1x16x128xf32>
      %39 = vector.shape_cast %38 : vector<1x16x128xf32> to vector<16x128xf32>
      %40 = vector.shape_cast %36 : vector<16x128xf32> to vector<1x16x128xf32>
      tpu.vector_store %arg12[%37, %c0_20, %c0_21], %40 {strides = array<i32>} : memref<1x16x128xf32, #tpu.memory_space<vmem>>, vector<1x16x128xf32>,
      %41 = math.absf %5 : vector<16x128xf32>
      %42 = arith.mulf %41, %36 : vector<16x128xf32>
      %cst_22 = arith.constant dense<0xFF800000> : vector<16xf32>
      %43 = vector.multi_reduction <maximumf>, %42, %cst_22 [1] : vector<16x128xf32> to vector<16xf32>
      %44 = vector.shape_cast %43 : vector<16xf32> to vector<16x1xf32>
      %c0_23 = arith.constant 0 : index
      %c0_24 = arith.constant 0 : index
      %45 = vector.load %arg8[%c0_23, %c0_24] : memref<16x1xf32, #tpu.memory_space<vmem>>, vector<16x1xf32>
      %46 = arith.maximumf %45, %44 : vector<16x1xf32>
      %c0_25 = arith.constant 0 : index
      %c0_26 = arith.constant 0 : index
      %47 = vector.load %arg8[%c0_25, %c0_26] : memref<16x1xf32, #tpu.memory_space<vmem>>, vector<16x1xf32>
      %48 = arith.subf %47, %46 : vector<16x1xf32>
      %49 = math.exp %48 : vector<16x1xf32>
      %c0_27 = arith.constant 0 : index
      %c0_28 = arith.constant 0 : index
      %50 = vector.load %arg9[%c0_27, %c0_28] : memref<16x1xf32, #tpu.memory_space<vmem>>, vector<16x1xf32>
      %51 = arith.mulf %50, %49 : vector<16x1xf32>
      %52 = vector.broadcast %46 : vector<16x1xf32> to vector<16x128xf32>
      %53 = arith.subf %36, %52 : vector<16x128xf32>
      %54 = math.exp %53 : vector<16x128xf32>
      %55 = arith.mulf %54, %41 : vector<16x128xf32>
      %cst_29 = arith.constant dense<0.000000e+00> : vector<16xf32>
      %56 = vector.multi_reduction <add>, %55, %cst_29 [1] : vector<16x128xf32> to vector<16xf32>
      %57 = vector.shape_cast %56 : vector<16xf32> to vector<16x1xf32>
      %58 = arith.addf %51, %57 : vector<16x1xf32>
      %c0_30 = arith.constant 0 : index
      %c0_31 = arith.constant 0 : index
      %59 = vector.load %arg9[%c0_30, %c0_31] : memref<16x1xf32, #tpu.memory_space<vmem>>, vector<16x1xf32>
      tpu.vector_store %arg9[%c0_30, %c0_31], %58 {strides = array<i32>} : memref<16x1xf32, #tpu.memory_space<vmem>>, vector<16x1xf32>,
      %c0_32 = arith.constant 0 : index
      %c0_33 = arith.constant 0 : index
      %60 = vector.load %arg8[%c0_32, %c0_33] : memref<16x1xf32, #tpu.memory_space<vmem>>, vector<16x1xf32>
      tpu.vector_store %arg8[%c0_32, %c0_33], %46 {strides = array<i32>} : memref<16x1xf32, #tpu.memory_space<vmem>>, vector<16x1xf32>,
      %c0_34 = arith.constant 0 : index
      %c0_35 = arith.constant 0 : index
      %61 = vector.load %arg11[%c0_34, %c0_35] : memref<16x1xf32, #tpu.memory_space<vmem>>, vector<16x1xf32>
      %cst_36 = arith.constant 0.000000e+00 : f32
      %62 = vector.broadcast %cst_36 : f32 to vector<16x128xf32>
      %63 = arith.maximumf %5, %62 : vector<16x128xf32>
      %cst_37 = arith.constant dense<0.000000e+00> : vector<16xf32>
      %64 = vector.multi_reduction <add>, %63, %cst_37 [1] : vector<16x128xf32> to vector<16xf32>
      %65 = vector.shape_cast %64 : vector<16xf32> to vector<16x1xf32>
      %66 = arith.addf %61, %65 : vector<16x1xf32>
      %c0_38 = arith.constant 0 : index
      %c0_39 = arith.constant 0 : index
      %67 = vector.load %arg11[%c0_38, %c0_39] : memref<16x1xf32, #tpu.memory_space<vmem>>, vector<16x1xf32>
      tpu.vector_store %arg11[%c0_38, %c0_39], %66 {strides = array<i32>} : memref<16x1xf32, #tpu.memory_space<vmem>>, vector<16x1xf32>,
    } else {
    }
    %c1_i32 = arith.constant 1 : i32
    %9 = arith.cmpi eq, %arg0, %c1_i32 : i32
    %10 = arith.extui %9 : i1 to i32
    %c0_i32_5 = arith.constant 0 : i32
    %11 = arith.cmpi ne, %10, %c0_i32_5 : i32
    scf.if %11 {
      %17 = arith.index_cast %arg1 : i32 to index
      %c0_9 = arith.constant 0 : index
      %c0_10 = arith.constant 0 : index
      %18 = vector.load %arg12[%17, %c0_9, %c0_10] : memref<1x16x128xf32, #tpu.memory_space<vmem>>, vector<1x16x128xf32>
      %19 = vector.shape_cast %18 : vector<1x16x128xf32> to vector<16x128xf32>
      %cst = arith.constant 0.000000e+00 : f32
      %20 = vector.broadcast %cst : f32 to vector<16x128xf32>
      %21 = arith.maximumf %5, %20 : vector<16x128xf32>
      %c0_11 = arith.constant 0 : index
      %c0_12 = arith.constant 0 : index
      %22 = vector.load %arg8[%c0_11, %c0_12] : memref<16x1xf32, #tpu.memory_space<vmem>>, vector<16x1xf32>
      %c0_13 = arith.constant 0 : index
      %c0_14 = arith.constant 0 : index
      %23 = vector.load %arg9[%c0_13, %c0_14] : memref<16x1xf32, #tpu.memory_space<vmem>>, vector<16x1xf32>
      %24 = math.log %23 : vector<16x1xf32>
      %25 = arith.addf %22, %24 : vector<16x1xf32>
      %26 = vector.broadcast %25 : vector<16x1xf32> to vector<16x128xf32>
      %27 = arith.subf %19, %26 : vector<16x128xf32>
      %cst_15 = arith.constant -23.0258503 : f32
      %cst_16 = arith.constant 0.000000e+00 : f32
      %28 = vector.broadcast %cst_15 : f32 to vector<16x128xf32>
      %29 = arith.maximumf %28, %27 : vector<16x128xf32>
      %30 = vector.broadcast %cst_16 : f32 to vector<16x128xf32>
      %31 = arith.minimumf %30, %29 : vector<16x128xf32>
      %c0_17 = arith.constant 0 : index
      %c0_18 = arith.constant 0 : index
      %32 = vector.load %arg10[%c0_17, %c0_18] : memref<16x1xf32, #tpu.memory_space<vmem>>, vector<16x1xf32>
      %33 = arith.mulf %31, %21 : vector<16x128xf32>
      %cst_19 = arith.constant dense<0.000000e+00> : vector<16xf32>
      %34 = vector.multi_reduction <add>, %33, %cst_19 [1] : vector<16x128xf32> to vector<16xf32>
      %35 = vector.shape_cast %34 : vector<16xf32> to vector<16x1xf32>
      %36 = arith.addf %32, %35 : vector<16x1xf32>
      %c0_20 = arith.constant 0 : index
      %c0_21 = arith.constant 0 : index
      %37 = vector.load %arg10[%c0_20, %c0_21] : memref<16x1xf32, #tpu.memory_space<vmem>>, vector<16x1xf32>
      tpu.vector_store %arg10[%c0_20, %c0_21], %36 {strides = array<i32>} : memref<16x1xf32, #tpu.memory_space<vmem>>, vector<16x1xf32>,
    } else {
    }
    %c1_i32_6 = arith.constant 1 : i32
    %12 = arith.cmpi eq, %arg0, %c1_i32_6 : i32
    %c0_i32_7 = arith.constant 0 : i32
    %13 = arith.cmpi eq, %arg1, %c0_i32_7 : i32
    %14 = arith.andi %12, %13 : i1
    %15 = arith.extui %14 : i1 to i32
    %c0_i32_8 = arith.constant 0 : i32
    %16 = arith.cmpi ne, %15, %c0_i32_8 : i32
    scf.if %16 {
      %c0_9 = arith.constant 0 : index
      %c0_10 = arith.constant 0 : index
      %17 = vector.load %arg11[%c0_9, %c0_10] : memref<16x1xf32, #tpu.memory_space<vmem>>, vector<16x1xf32>
      %cst = arith.constant 1.000000e+00 : f32
      %18 = vector.broadcast %cst : f32 to vector<16x1xf32>
      %19 = arith.maximumf %17, %18 : vector<16x1xf32>
      %20 = tpu.reciprocal %19 : vector<16x1xf32> -> vector<16x1xf32>
      %c0_11 = arith.constant 0 : index
      %c0_12 = arith.constant 0 : index
      %21 = vector.load %arg10[%c0_11, %c0_12] : memref<16x1xf32, #tpu.memory_space<vmem>>, vector<16x1xf32>
      %22 = arith.mulf %21, %20 : vector<16x1xf32>
      %23 = vector.shape_cast %22 : vector<16x1xf32> to vector<1x16x1xf32>
      %cst_13 = arith.constant dense<0.000000e+00> : vector<1xf32>
      %24 = vector.multi_reduction <add>, %23, %cst_13 [1, 2] : vector<1x16x1xf32> to vector<1xf32>
      %25 = vector.shape_cast %24 : vector<1xf32> to vector<1x1x1xf32>
      %26 = vector.extract %25[0, 0, 0] : f32 from vector<1x1x1xf32>
      %cst_14 = arith.constant 0.000000e+00 : f32
      %27 = arith.subf %cst_14, %26 : f32
      %c0_15 = arith.constant 0 : index
      %c0_16 = arith.constant 0 : index
      %28 = memref.load %arg7[%c0_15, %c0_16] : memref<1x1xf32, #tpu.memory_space<smem>>
      memref.store %27, %arg7[%c0_15, %c0_16] : memref<1x1xf32, #tpu.memory_space<smem>>
    } else {
    }
    return
  }
  func.func @transform_0(%arg0: i32, %arg1: i32) -> (i32, i32) {
    %c0_i32 = arith.constant 0 : i32
    %c0_i32_0 = arith.constant 0 : i32
    %c0_i32_1 = arith.constant 0 : i32
    return %c0_i32, %c0_i32_0 : i32, i32
  }
  func.func @transform_1(%arg0: i32, %arg1: i32) -> (i32, i32) {
    %c1_i32 = arith.constant 1 : i32
    %0 = arith.subi %c1_i32, %arg0 : i32
    %1 = arith.muli %arg1, %0 : i32
    %c0_i32 = arith.constant 0 : i32
    %2 = arith.muli %c0_i32, %arg0 : i32
    %3 = arith.addi %1, %2 : i32
    %c0_i32_0 = arith.constant 0 : i32
    %c0_i32_1 = arith.constant 0 : i32
    return %3, %c0_i32_0 : i32, i32
  }
  func.func @transform_2(%arg0: i32, %arg1: i32) -> (i32, i32) {
    %c1_i32 = arith.constant 1 : i32
    %0 = arith.subi %c1_i32, %arg0 : i32
    %1 = arith.muli %arg1, %0 : i32
    %c0_i32 = arith.constant 0 : i32
    %2 = arith.muli %c0_i32, %arg0 : i32
    %3 = arith.addi %1, %2 : i32
    %c0_i32_0 = arith.constant 0 : i32
    %c0_i32_1 = arith.constant 0 : i32
    return %3, %c0_i32_0 : i32, i32
  }
  func.func @transform_3(%arg0: i32, %arg1: i32) -> (i32, i32) {
    %c1_i32 = arith.constant 1 : i32
    %0 = arith.subi %c1_i32, %arg0 : i32
    %1 = arith.muli %arg1, %0 : i32
    %c0_i32 = arith.constant 0 : i32
    %2 = arith.muli %c0_i32, %arg0 : i32
    %3 = arith.addi %1, %2 : i32
    %c0_i32_0 = arith.constant 0 : i32
    %c0_i32_1 = arith.constant 0 : i32
    return %3, %c0_i32_0 : i32, i32
  }
  func.func @transform_4(%arg0: i32, %arg1: i32) -> (i32, i32) {
    %c0_i32 = arith.constant 0 : i32
    %c0_i32_0 = arith.constant 0 : i32
    return %c0_i32, %arg1 : i32, i32
  }
  func.func @transform_5(%arg0: i32, %arg1: i32) -> (i32, i32) {
    %c0_i32 = arith.constant 0 : i32
    %c0_i32_0 = arith.constant 0 : i32
    %c0_i32_1 = arith.constant 0 : i32
    return %c0_i32, %c0_i32_0 : i32, i32
  }
}

</mosaic_0001>

<bundles_post_ra>
// kernel: tpu_custom_call.1
= control target key start
LH: loop header
LB: loop body
LE: loop exit
PB: predicated region body
PF: predicated region fallthrough
CT: control target
= control target key end

     0   :  { %10 = vsyncpa [#allocation8], 0  ;;  %s1823_s0 = inlined_call_operand.hbm [shape: bf16[16,128], index: 0, kind: input, shape index: {}]   ;;  %s1824_s1 = inlined_call_operand.hbm [shape: bf16[128,128], index: 1, kind: input, shape index: {}]   ;;  %s1825_s2 = inlined_call_operand.hbm [shape: bf16[128,128], index: 2, kind: input, shape index: {}]   ;;  %s1826_s3 = inlined_call_operand.hbm [shape: bf16[128,128], index: 3, kind: input, shape index: {}]   ;;  %s1827_s4 = inlined_call_operand.hbm [shape: f32[16,128], index: 4, kind: input, shape index: {}]   ;;  %s1828_s5 = inlined_call_operand.hbm [shape: f32[1,1], index: 5, kind: output, shape index: {}]  }
   0x1   :  { %11 = vsyncpa [#allocation11], 0 }
   0x2   :  { %13 = vsyncpa [#allocation11 + $0x1], 0 }
   0x3   :  { %14 = vsyncpa [#allocation14], 0 }
   0x4   :  { %16 = vsyncpa [#allocation14 + $0x1], 0 }
   0x5   :  { %17 = vsyncpa [#allocation9], 0  ;;  %s1575_s18 = smov 0   ;;  %s1577_s19 = smov 0  }
   0x6   :  { %s1579_s20 = smov 0  }
   0x7 LB: > { %s1529_s21 = smov [#allocation15]   ;;  %s1591_s23 = sadd.s32 4294967295, %s1527_s20   ;;  %s1527_s20 = sphi %s1579_s20, %s23_s20   ;;  %s1523_s19 = sphi %s1577_s19, %s1858_s19   ;;  %s1519_s18 = sphi %s1575_s18, %s1857_s18  }
   0x8   : > { %s225_s22 = sshll.u32 %s1529_s21, 4  ;;  %p983_p0 = scmp.ge.s32.totalorder %s1527_s20, 1  ;;  %s1596_s22 = int_to_ptr.vmem [resolvable:$true] %s225_s22 }
   0x9   : > { %p198_p1 = scmp.lt.s32.totalorder %s1527_s20, 3  ;;  %p1829_p2 = scmp.eq.s32.totalorder %s1591_s23, 0 }
   0xa   : > { %p1198_p6 = scmp.lt.s32.totalorder %s1527_s20, 2  ;;  %s239_s26 = sand.u32 1, %s1527_s20  }
   0xb   : > { %p1598_p3 = pnand %p983_p0, %p198_p1  ;;  %s1333_s29 = scalar_lea.hbm %s1827_s4, 256 }
   0xc   : > { %p1334_p8 = scmp.ne.s32.totalorder %s1827_s4, %s1333_s29  ;;  %p1340_p12 = scmp.lt.u32.totalorder %s1333_s29, %s1827_s4 }
   0xd   : > { %s1838_s24 = scalar_select %p1598_p3, 1, 0 }
   0xe   : > { %p1179_p4 = pneg %p1598_p3 }
  0x10   : > { %p1606_p5 = pnand %p1829_p2, %p1179_p4 }
  0x12   : > { %s1839_s25 = scalar_select %p1606_p5, 1, 0 }
  0x13   : > { %p1830_p9 = pneg %p1606_p5 }
  0x15   : > { %p1336_p10 = pnand %p1830_p9, %p1334_p8 }
  0x17   : > { %p1337_p11 = pneg %p1336_p10 }
  0x19   : > { %p1342_p13 = pnand %p1340_p12, %p1337_p11 }
  0x1b   : > { %1345 = shalt.err (!%p1342_p13)
}
  0x1c   : > { %s1346_s9 = scalar_lea.vmem %s1596_s22, 256  ;;  %p1354_p2 = scmp.lt.s32.totalorder %s1596_s22, %s1596_s22 }
  0x1d   : > { %p1347_p0 = scmp.ne.s32.totalorder %s1596_s22, %s1346_s9  ;;  %p1355_p8 = scmp.lt.s32.totalorder %s1346_s9, %s1346_s9 }
  0x1f   : > { %p1349_p1 = pnand %p1347_p0, %p1830_p9  ;;  %p1356_p10 = por %p1355_p8, %p1354_p2 }
  0x21   : > { %p1350_p4 = pneg %p1349_p1 }
  0x23   : > { %p1357_p7 = pnand %p1356_p10, %p1350_p4 }
  0x25   : > { %1360 = shalt.err (!%p1357_p7)
}
  0x26   : > { %s1530_s10 = smov 128   ;;  %s1531_s11 = smov 8  }
  0x27   : > { %1185 = dma.hbm_to_vmem [thread:$0]  (!%p1606_p5), %s1827_s4, 256, %s1596_s22, [#allocation14], %s1530_s10, %s1530_s10, %s1531_s11  }
  0x28   : > { %p1840_p11 = scmp.eq.s32.totalorder %s1527_s20, 0  ;;  %s1532_s15 = smov [#allocation10]  }
  0x29   : > { %s252_s16 = sshll.u32 %s1532_s15, 4  ;;  %s1650_s17 = scalar_lea.sflag [#allocation11], %s239_s26  ;;  %s253_s16 = int_to_ptr.vmem [resolvable:$true] %s252_s16 }
  0x2a   : > { %p1644_p12 = pnand %p1840_p11, %p1198_p6  ;;  %s1361_s28 = scalar_lea.hbm %s1824_s1, 1024 }
  0x2b   : > { %p1362_p2 = scmp.ne.s32.totalorder %s1824_s1, %s1361_s28  ;;  %p1368_p0 = scmp.lt.u32.totalorder %s1361_s28, %s1824_s1 }
  0x2c   : > { %s1841_s14 = scalar_select %p1644_p12, 1, 0 }
  0x2d   : > { %p1660_p6 = pneg %p1644_p12 }
  0x2f   : > { %s1842_s22 = scalar_select %p1660_p6, 1, 0 }
  0x30   : > { %p1364_p7 = pnand %p1660_p6, %p1362_p2 }
  0x32   : > { %p1365_p13 = pneg %p1364_p7 }
  0x34   : > { %p1370_p1 = pnand %p1368_p0, %p1365_p13 }
  0x36   : > { %1373 = shalt.err (!%p1370_p1)
}
  0x37   : > { %s1374_s8 = scalar_lea.vmem %s253_s16, 1024  ;;  %s1381_s9 = scalar_lea.vmem %s253_s16, 2048 }
  0x38   : > { %p1375_p4 = scmp.ne.s32.totalorder %s253_s16, %s1374_s8  ;;  %p1382_p11 = scmp.lt.s32.totalorder %s253_s16, %s253_s16 }
  0x39   : > { %p1383_p9 = scmp.lt.s32.totalorder %s1381_s9, %s1374_s8 }
  0x3a   : > { %p1377_p8 = pnand %p1375_p4, %p1660_p6 }
  0x3b   : > { %p1384_p3 = por %p1383_p9, %p1382_p11 }
  0x3c   : > { %p1378_p10 = pneg %p1377_p8 }
  0x3e   : > { %p1385_p5 = pnand %p1384_p3, %p1378_p10 }
  0x40   : > { %1388 = shalt.err (!%p1385_p5)
}
  0x41   : > { %s1533_s10 = smov 64   ;;  %s1534_s11 = smov 4  }
  0x42   : > { %1189 = dma.hbm_to_vmem [thread:$0]  (!%p1644_p12), %s1824_s1, 1024, %s253_s16, %s1650_s17, %s1533_s10, %s1533_s10, %s1534_s11  }
  0x43   : > { %s35_s15 = sadd.s32 1, %s1523_s19  ;;  %s1535_s21 = smov [#allocation7]  }
  0x44   : > { %p37_p2 = scmp.ge.s32.totalorder %s35_s15, 2  ;;  %s210_s27 = sshll.u32 %s1535_s21, 4  ;;  %s211_s27 = int_to_ptr.vmem [resolvable:$true] %s210_s27 }
  0x45   : > { %s1389_s30 = scalar_lea.hbm %s1823_s0, 128  ;;  %p1843_p5 = scmp.ne.s32.totalorder %s1839_s25, 0 }
  0x46   : > { %s1860_s15 = smov (%p37_p2, %s35_s15), 0  ;;  %p1390_p3 = scmp.ne.s32.totalorder %s1823_s0, %s1389_s30 }
  0x47   : > { %p1844_p9 = pneg %p1843_p5  ;;  %p1396_p0 = scmp.lt.u32.totalorder %s1389_s30, %s1823_s0 }
  0x49   : > { %p1392_p7 = pnand %p1390_p3, %p1844_p9 }
  0x4b   : > { %p1393_p13 = pneg %p1392_p7 }
  0x4d   : > { %p1398_p1 = pnand %p1396_p0, %p1393_p13 }
  0x4f   : > { %1401 = shalt.err (!%p1398_p1)
}
  0x50   : > { %s1402_s9 = scalar_lea.vmem %s211_s27, 128  ;;  %p1845_p8 = pmov %p1844_p9 }
  0x51   : > { %p1403_p4 = scmp.ne.s32.totalorder %s211_s27, %s1402_s9  ;;  %p1410_p2 = scmp.lt.s32.totalorder %s211_s27, %s211_s27 }
  0x52   : > { %p1411_p12 = scmp.lt.s32.totalorder %s1402_s9, %s1402_s9 }
  0x53   : > { %p1405_p10 = pnand %p1403_p4, %p1845_p8 }
  0x54   : > { %p1412_p6 = por %p1411_p12, %p1410_p2 }
  0x55   : > { %p1406_p11 = pneg %p1405_p10 }
  0x57   : > { %p1413_p3 = pnand %p1412_p6, %p1406_p11 }
  0x59   : > { %1416 = shalt.err (!%p1413_p3)
}
  0x5a   : > { %1182 = dma.hbm_to_vmem [thread:$0]  (!%p1843_p5), %s1823_s0, 128, %s211_s27, [#allocation8], %s1533_s10, %s1533_s10, %s1534_s11  }
  0x5b   : > { %s1536_s21 = smov [#allocation12]   ;;  %s1537_s29 = smov [#allocation13]  }
  0x5c   : > { %s275_s28 = sshll.u32 %s1536_s21, 4  ;;  %s298_s30 = sshll.u32 %s1537_s29, 4  ;;  %s276_s28 = int_to_ptr.vmem [resolvable:$true] %s275_s28  ;;  %s299_s30 = int_to_ptr.vmem [resolvable:$true] %s298_s30 }
  0x5d   : > { %s1417_s16 = scalar_lea.hbm %s1825_s2, 1024  ;;  %p1846_p6 = scmp.ne.s32.totalorder %s1842_s22, 0 }
  0x5e   : > { %p1418_p12 = scmp.ne.s32.totalorder %s1825_s2, %s1417_s16  ;;  %p1424_p5 = scmp.lt.u32.totalorder %s1417_s16, %s1825_s2 }
  0x60   : > { %p1420_p9 = pnand %p1418_p12, %p1846_p6 }
  0x62   : > { %p1421_p7 = pneg %p1420_p9 }
  0x64   : > { %p1426_p13 = pnand %p1424_p5, %p1421_p7 }
  0x66   : > { %1429 = shalt.err (!%p1426_p13)
}
  0x67   : > { %s1430_s27 = scalar_lea.vmem %s276_s28, 1024  ;;  %s1437_s13 = scalar_lea.vmem %s276_s28, 2048 }
  0x68   : > { %p1431_p0 = scmp.ne.s32.totalorder %s276_s28, %s1430_s27  ;;  %p1438_p8 = scmp.lt.s32.totalorder %s276_s28, %s276_s28 }
  0x69   : > { %p1439_p10 = scmp.lt.s32.totalorder %s1437_s13, %s1430_s27 }
  0x6a   : > { %p1433_p1 = pnand %p1431_p0, %p1846_p6 }
  0x6b   : > { %p1440_p11 = por %p1439_p10, %p1438_p8 }
  0x6c   : > { %p1434_p4 = pneg %p1433_p1 }
  0x6e   : > { %p1441_p2 = pnand %p1440_p11, %p1434_p4 }
  0x70   : > { %1444 = shalt.err (!%p1441_p2)
}
  0x71   : > { %p1847_p3 = scmp.ne.s32.totalorder %s1841_s14, 0  ;;  %s286_s6 = scalar_lea.sflag [#allocation14], %s239_s26 }
  0x72   : > { %s1445_s8 = scalar_lea.hbm %s1826_s3, 1024 }
  0x73   : > { %1192 = dma.hbm_to_vmem [thread:$0]  (!%p1847_p3), %s1825_s2, 1024, %s276_s28, %s1650_s17, %s1533_s10, %s1533_s10, %s1534_s11  }
  0x74   : > { %p1446_p12 = scmp.ne.s32.totalorder %s1826_s3, %s1445_s8  ;;  %p1452_p5 = scmp.lt.u32.totalorder %s1445_s8, %s1826_s3 }
  0x76   : > { %p1448_p9 = pnand %p1446_p12, %p1846_p6 }
  0x78   : > { %p1449_p7 = pneg %p1448_p9 }
  0x7a   : > { %p1454_p13 = pnand %p1452_p5, %p1449_p7 }
  0x7c   : > { %1457 = shalt.err (!%p1454_p13)
}
  0x7d   : > { %s1458_s17 = scalar_lea.vmem %s299_s30, 1024  ;;  %s1465_s26 = scalar_lea.vmem %s299_s30, 2048 }
  0x7e   : > { %p1459_p0 = scmp.ne.s32.totalorder %s299_s30, %s1458_s17  ;;  %p1466_p8 = scmp.lt.s32.totalorder %s299_s30, %s299_s30 }
  0x7f   : > { %p1467_p10 = scmp.lt.s32.totalorder %s1465_s26, %s1458_s17 }
  0x80   : > { %p1461_p1 = pnand %p1459_p0, %p1846_p6 }
  0x81   : > { %p1468_p11 = por %p1467_p10, %p1466_p8 }
  0x82   : > { %p1462_p4 = pneg %p1461_p1 }
  0x84   : > { %p1469_p2 = pnand %p1468_p11, %p1462_p4 }
  0x86   : > { %1472 = shalt.err (!%p1469_p2)
}
  0x87   : > { %1195 = dma.hbm_to_vmem [thread:$0]  (!%p1847_p3), %s1826_s3, 1024, %s299_s30, %s286_s6, %s1533_s10, %s1533_s10, %s1534_s11  }
  0x88   : > { %p1848_p12 = scmp.ne.s32.totalorder %s1838_s24, 0 }
  0x89   : > { %p1849_p6 = scmp.eq.s32.totalorder (!%p1848_p12), %s1591_s23, 0 }
  0x8a   : > { %310 = sbr.rel (%p1848_p12) target bundleno = 1469 (0x5bd), region = 40 }
  0x91   : > { %1498 = dma.done.wait (%p1849_p6), [#allocation8], 128   ;;  %p1850_p9 = pmov %p1849_p6 }
  0x92   : > { %s316_s22 = sand.u32 1, %s1591_s23   ;;  %p1851_p7 = pmov %p1849_p6 }
  0x93   : > { %1500 = vsyncadd (%p1850_p9), [#allocation8], 4294967168  ;;  %s317_s14 = scalar_lea.sflag [#allocation11], %s316_s22 }
  0x94   : > { %1502 = dma.done.wait (%p1851_p7), %s317_s14, 2048   ;;  %p1852_p5 = pmov %p1849_p6 }
  0x95   : > { %s335_s10 = scalar_lea.sflag [#allocation14], %s316_s22 }
  0x96   : > { %1504 = vsyncadd (%p1852_p5), %s317_s14, 4294965248  ;;  %p1853_p3 = pmov %p1852_p5 }
  0x98   : > { %1506 = dma.done.wait (%p1853_p3), %s335_s10, 1024   ;;  %p1854_p13 = pmov %p1853_p3 }
  0x99   : > { %p1855_p0 = pmov %p1853_p3 }
  0x9a   : > { %1508 = vsyncadd (%p1854_p13), %s335_s10, 4294966272 }
  0x9b   : > { %1510 = dma.done.wait (%p1855_p0), [#allocation14], 256   ;;  %p1856_p1 = pmov %p1855_p0 }
  0x9c   : > { %p384_p4 = scmp.eq.s32.totalorder %s1519_s18, 0 }
  0x9d   : > { %1512 = vsyncadd (%p1856_p1), [#allocation14], 4294967040  ;;  %vm390_vm0 = vcmask (%p384_p4), 7168   ;;  %v1538_v0 = vmov (%p384_p4), -inf   ;;  %v1539_v1 = vmov (%p384_p4), 0.0  }
  0x9e   : > { %389 = sbr.rel (!%p384_p4) target bundleno = 165 (0xa5), region = 64  ;;  %391 = vst.msk [vmem:[#allocation2] sm:$0xff] (%p384_p4), %vm390_vm0, %v1538_v0  ;;  %392 = vst.msk [vmem:[#allocation2 + $0x8] sm:$0xff] (%p384_p4), %vm390_vm0, %v1538_v0 }
  0x9f   : > { %393 = vst.msk [vmem:[#allocation3] sm:$0xff] (%p384_p4), %vm390_vm0, %v1539_v1  ;;  %394 = vst.msk [vmem:[#allocation3 + $0x8] sm:$0xff] (%p384_p4), %vm390_vm0, %v1539_v1 }
  0xa0   : > { %395 = vst.msk [vmem:[#allocation4] sm:$0xff] (%p384_p4), %vm390_vm0, %v1539_v1  ;;  %396 = vst.msk [vmem:[#allocation4 + $0x8] sm:$0xff] (%p384_p4), %vm390_vm0, %v1539_v1 }
  0xa1   : > { %397 = vst.msk [vmem:[#allocation5] sm:$0xff] (%p384_p4), %vm390_vm0, %v1539_v1  ;;  %398 = vst.msk [vmem:[#allocation5 + $0x8] sm:$0xff] (%p384_p4), %vm390_vm0, %v1539_v1 }
  0xa5 PF: > { %v1771_v2 = vld [vmem:[#allocation15] sm:$0xff]  ;;  %v1773_v3 = vld [vmem:[#allocation15 + $0x8] sm:$0xff]  ;;  %p997_p8 = scmp.ne.s32.totalorder %s1519_s18, 0 }
  0xa6   : > { %v1008_v4 = vld [vmem:[#allocation13] sm:$0xff] (!%p997_p8)   ;;  %v1540_v5 = vmov (!%p997_p8), 0.0   ;;  %v1103_v8 = vld [vmem:[#allocation13 + $0x8] sm:$0xff] (!%p997_p8)   ;;  %vm1541_vm1 = vmmov (!%p997_p8), 0   ;;  %v1104_v11 = vld [vmem:[#allocation13 + $0x10] sm:$0xff] (!%p997_p8)   ;;  %vm751_vm2 = vcmask (!%p997_p8), 7168  }
  0xa7   : > { %403 = sbr.rel (%p997_p8) target bundleno = 925 (0x39d), region = 68  ;;  %1133 = vmatprep.subr.bf16.mxu0 (!%p997_p8), %v1540_v5  ;;  %v1009_v6 = vunpack.c.l.bf16 (!%p997_p8), %v1008_v4  ;;  %v1010_v7 = vunpack.c.h.bf16 (!%p997_p8), %v1008_v4  ;;  %1149 = vmatprep.mubr.msk.bf16.mxu0 (!%p997_p8), %vm1541_vm1, %v1540_v5  ;;  %v1013_v9 = vunpack.c.l.bf16 (!%p997_p8), %v1103_v8  ;;  %v1014_v10 = vunpack.c.h.bf16 (!%p997_p8), %v1103_v8  ;;  %v1105_v20 = vld [vmem:[#allocation13 + $0x18] sm:$0xff] (!%p997_p8)   ;;  %v1106_v27 = vld [vmem:[#allocation13 + $0x20] sm:$0xff] (!%p997_p8)   ;;  %v1107_v41 = vld [vmem:[#allocation13 + $0x28] sm:$0xff] (!%p997_p8)  }
  0xa8   : > { %v1017_v18 = vunpack.c.l.bf16 (!%p997_p8), %v1104_v11  ;;  %v1018_v19 = vunpack.c.h.bf16 (!%p997_p8), %v1104_v11  ;;  %v1021_v25 = vunpack.c.l.bf16 (!%p997_p8), %v1105_v20  ;;  %v1022_v26 = vunpack.c.h.bf16 (!%p997_p8), %v1105_v20  ;;  %v1040_v55 = vld [vmem:[#allocation10] sm:$0xff] (!%p997_p8)   ;;  %v1108_v57 = vld [vmem:[#allocation13 + $0x30] sm:$0xff] (!%p997_p8)   ;;  %v1110_v60 = vld [vmem:[#allocation10 + $0x8] sm:$0xff] (!%p997_p8)  }
  0xa9   : > { %v436_v12 = vsub.f32 (!%p997_p8), 0.0, %v1009_v6  ;;  %v437_v13 = vsub.f32 (!%p997_p8), 0.0, %v1010_v7  ;;  %v438_v14 = vsub.f32 (!%p997_p8), 0.0, %v1013_v9  ;;  %v439_v15 = vsub.f32 (!%p997_p8), 0.0, %v1014_v10  ;;  %v1072_v59 = vld [vmem:[#allocation12] sm:$0xff] (!%p997_p8)   ;;  %v1117_v0 = vld [vmem:[#allocation12 + $0x8] sm:$0xff] (!%p997_p8)  }
  0xaa   : > { %v440_v23 = vsub.f32 (!%p997_p8), 0.0, %v1017_v18  ;;  %v441_v24 = vsub.f32 (!%p997_p8), 0.0, %v1018_v19  ;;  %v442_v30 = vsub.f32 (!%p997_p8), 0.0, %v1021_v25  ;;  %v443_v31 = vsub.f32 (!%p997_p8), 0.0, %v1022_v26  ;;  %v1109_v19 = vld [vmem:[#allocation13 + $0x38] sm:$0xff] (!%p997_p8)  }
  0xab   : > { %v452_v16 = vmul.f32 (!%p997_p8), 1.442695, %v436_v12  ;;  %v454_v17 = vmul.f32 (!%p997_p8), 1.442695, %v437_v13  ;;  %v456_v21 = vmul.f32 (!%p997_p8), 1.442695, %v438_v14  ;;  %v1025_v32 = vunpack.c.l.bf16 (!%p997_p8), %v1106_v27 }
  0xac   : > { %v458_v22 = vmul.f32 (!%p997_p8), 1.442695, %v439_v15  ;;  %v460_v28 = vmul.f32 (!%p997_p8), 1.442695, %v440_v23  ;;  %v462_v29 = vmul.f32 (!%p997_p8), 1.442695, %v441_v24  ;;  %v1026_v34 = vunpack.c.h.bf16 (!%p997_p8), %v1106_v27 }
  0xad   : > { %1252 = vpow2.f32 (!%p997_p8), %v452_v16  ;;  %v464_v33 = vmul.f32 (!%p997_p8), 1.442695, %v442_v30  ;;  %v466_v35 = vmul.f32 (!%p997_p8), 1.442695, %v443_v31  ;;  %v444_v36 = vsub.f32 (!%p997_p8), 0.0, %v1025_v32 }
  0xae   : > { %1254 = vpow2.f32 %v454_v17  ;;  %v445_v37 = vsub.f32 0.0, %v1026_v34  ;;  %v1029_v48 = vunpack.c.l.bf16 %v1107_v41  ;;  %v1030_v53 = vunpack.c.h.bf16 %v1107_v41 }
  0xaf   : > { %1256 = vpow2.f32 %v456_v21  ;;  %v468_v38 = vmul.f32 1.442695, %v444_v36  ;;  %v1041_v63 = vunpack.c.l.bf16 %v1040_v55  ;;  %v1033_v1 = vunpack.c.l.bf16 %v1108_v57 }
  0xb0   : > { %1258 = vpow2.f32 %v458_v22  ;;  %v470_v39 = vmul.f32 1.442695, %v445_v37  ;;  %v446_v56 = vsub.f32 0.0, %v1029_v48  ;;  %v447_v61 = vsub.f32 0.0, %v1030_v53 }
  0xb1   : > { %1260 = vpow2.f32 %v460_v28  ;;  %v1042_v6 = vunpack.c.h.bf16 %v1040_v55  ;;  %v1034_v8 = vunpack.c.h.bf16 %v1108_v57  ;;  %v1073_v10 = vunpack.c.l.bf16 %v1072_v59 }
  0xb2   : > { %1262 = vpow2.f32 %v462_v29  ;;  %v472_v7 = vmul.f32 1.442695, %v446_v56  ;;  %v1074_v11 = vunpack.c.h.bf16 %v1072_v59  ;;  %v1045_v12 = vunpack.c.l.bf16 %v1110_v60 }
  0xb3   : > { %1264 = vpow2.f32 %v464_v33  ;;  %v1046_v15 = vunpack.c.h.bf16 %v1110_v60  ;;  %v1077_v16 = vunpack.c.l.bf16 %v1117_v0  ;;  %v1078_v17 = vunpack.c.h.bf16 %v1117_v0  ;;  %v1112_v0 = vld [vmem:[#allocation10 + $0x18] sm:$0xff]  }
  0xb4   : > { %1266 = vpow2.f32 %v466_v35  ;;  %v474_v18 = vmul.f32 1.442695, %v447_v61  ;;  %v448_v24 = vsub.f32 0.0, %v1033_v1  ;;  %v449_v28 = vsub.f32 0.0, %v1034_v8  ;;  %v1111_v35 = vld [vmem:[#allocation10 + $0x10] sm:$0xff]  }
  0xb5   : > { %1268 = vpow2.f32 %v468_v38  ;;  %v1037_v32 = vunpack.c.l.bf16 %v1109_v19 }
  0xb6   : > { %1270 = vpow2.f32 %v470_v39  ;;  %v476_v48 = vmul.f32 1.442695, %v448_v24 }
  0xb7   : > { %v1253_v40 = vpop.eup %1252  ;;  %v450_v55 = vsub.f32 0.0, %v1037_v32 }
  0xb8   : > { %v1255_v42 = vpop.eup %1254  ;;  %v484_v43 = vadd.f32 1.0, %v1253_v40 }
  0xb9   : > { %v1257_v44 = vpop.eup %1256  ;;  %v485_v45 = vadd.f32 1.0, %v1255_v42  ;;  %v480_v1 = vmul.f32 1.442695, %v450_v55 }
  0xba   : > { %v1259_v46 = vpop.eup %1258  ;;  %1272 = vrcp.f32 %v484_v43  ;;  %v486_v47 = vadd.f32 1.0, %v1257_v44 }
  0xbb   : > { %v1261_v49 = vpop.eup %1260  ;;  %1274 = vrcp.f32 %v485_v45  ;;  %v487_v50 = vadd.f32 1.0, %v1259_v46  ;;  %v1118_v45 = vld [vmem:[#allocation12 + $0x10] sm:$0xff]  }
  0xbc   : > { %v1263_v51 = vpop.eup %1262  ;;  %1276 = vrcp.f32 %v486_v47  ;;  %v488_v52 = vadd.f32 1.0, %v1261_v49  ;;  %v1049_v47 = vunpack.c.l.bf16 %v1111_v35  ;;  %v1038_v49 = vunpack.c.h.bf16 %v1109_v19 }
  0xbd   : > { %1278 = vrcp.f32 %v487_v50  ;;  %v489_v54 = vadd.f32 1.0, %v1263_v51  ;;  %v1265_v58 = vpop.eup %1264  ;;  %v1050_v51 = vunpack.c.h.bf16 %v1111_v35  ;;  %v1081_v53 = vunpack.c.l.bf16 %v1118_v45 }
  0xbe   : > { %1280 = vrcp.f32 %v488_v52  ;;  %v1267_v62 = vpop.eup %1266  ;;  %v490_v13 = vadd.f32 1.0, %v1265_v58  ;;  %v478_v52 = vmul.f32 1.442695, %v449_v28  ;;  %v451_v60 = vsub.f32 0.0, %v1038_v49  ;;  %v1120_v28 = vld [vmem:[#allocation12 + $0x20] sm:$0xff]  }
  0xbf   : > { %1282 = vrcp.f32 %v489_v54  ;;  %v1269_v4 = vpop.eup %1268  ;;  %v491_v23 = vadd.f32 1.0, %v1267_v62  ;;  %v1082_v54 = vunpack.c.h.bf16 %v1118_v45 }
  0xc0   : > { %v1271_v9 = vpop.eup %1270  ;;  %1284 = vpow2.f32 %v472_v7  ;;  %v492_v36 = vadd.f32 1.0, %v1269_v4 }
  0xc1   : > { %1286 = vrcp.f32 %v490_v13  ;;  %v493_v39 = vadd.f32 1.0, %v1271_v9  ;;  %v1053_v13 = vunpack.c.l.bf16 %v1112_v0 }
  0xc2   : > { %1288 = vpow2.f32 %v474_v18 }
  0xc3   : > { %1290 = vrcp.f32 %v491_v23 }
  0xc4   : > { %v1273_v14 = vpop.eup %1272  ;;  %1292 = vrcp.f32 %v492_v36  ;;  %v1089_v36 = vunpack.c.l.bf16 %v1120_v28 }
  0xc5   : > { %v1275_v20 = vpop.eup %1274  ;;  %v548_v21 = vmul.f32 %v1273_v14, %v1041_v63  ;;  %v564_v22 = vsub.f32 1.0, %v1273_v14  ;;  %1294 = vrcp.f32 %v493_v39  ;;  %v1054_v14 = vunpack.c.h.bf16 %v1112_v0 }
  0xc6   : > { %v1277_v25 = vpop.eup %1276  ;;  %v549_v26 = vmul.f32 %v1275_v20, %v1042_v6  ;;  %v565_v27 = vsub.f32 1.0, %v1275_v20  ;;  %1296 = vpow2.f32 %v476_v48 }
  0xc7   : > { %v1279_v29 = vpop.eup %1278  ;;  %v612_v30 = vmul.f32 %v1073_v10, %v564_v22  ;;  %v566_v31 = vsub.f32 1.0, %v1277_v25  ;;  %v550_v38 = vmul.f32 %v1277_v25, %v1045_v12  ;;  %1298 = vpow2.f32 %v478_v52  ;;  %v1119_v10 = vld [vmem:[#allocation12 + $0x18] sm:$0xff]  }
  0xc8   : > { %v613_v33 = vmul.f32 %v1074_v11, %v565_v27  ;;  %v567_v34 = vsub.f32 1.0, %v1279_v29  ;;  %v1281_v40 = vpop.eup %1280  ;;  %v551_v42 = vmul.f32 %v1279_v29, %v1046_v15  ;;  %v482_v12 = vmul.f32 1.442695, %v451_v60  ;;  %v1113_v27 = vld [vmem:[#allocation10 + $0x20] sm:$0xff]  }
  0xc9   : > { %v628_v37 = vadd.f32 %v612_v30, %v548_v21  ;;  %v614_v43 = vmul.f32 %v1077_v16, %v566_v31  ;;  %v1283_v46 = vpop.eup %1282  ;;  %v568_v58 = vsub.f32 1.0, %v1281_v40  ;;  %v552_v63 = vmul.f32 %v1281_v40, %v1049_v47 }
  0xca   : > { %v629_v41 = vadd.f32 %v613_v33, %v549_v26  ;;  %v615_v44 = vmul.f32 %v1078_v17, %v567_v34  ;;  %v569_v59 = vsub.f32 1.0, %v1283_v46  ;;  %v1285_v61 = vpop.eup %1284  ;;  %v553_v7 = vmul.f32 %v1283_v46, %v1050_v51 }
  0xcb   : > { %v630_v56 = vadd.f32 %v614_v43, %v550_v38  ;;  %v1287_v62 = vpop.eup %1286  ;;  %v616_v8 = vmul.f32 %v1081_v53, %v568_v58  ;;  %v494_v15 = vadd.f32 1.0, %v1285_v61  ;;  %v1085_v16 = vunpack.c.l.bf16 %v1119_v10 }
  0xcc   : > { %v644_v50 = vpack.c.bf16 %v629_v41, %v628_v37  ;;  %v631_v57 = vadd.f32 %v615_v44, %v551_v42  ;;  %v1289_v4 = vpop.eup %1288  ;;  %v617_v9 = vmul.f32 %v1082_v54, %v569_v59  ;;  %v1086_v17 = vunpack.c.h.bf16 %v1119_v10  ;;  %v1121_v54 = vld [vmem:[#allocation12 + $0x28] sm:$0xff]   ;;  %v1115_v10 = vld [vmem:[#allocation10 + $0x30] sm:$0xff]  }
  0xcd   : > { %v1291_v11 = vpop.eup %1290  ;;  %v495_v18 = vadd.f32 1.0, %v1289_v4  ;;  %1300 = vpow2.f32 %v480_v1  ;;  %v632_v20 = vadd.f32 %v616_v8, %v552_v63  ;;  %v570_v22 = vsub.f32 1.0, %v1287_v62 }
  0xce   : > { %1134 = vmatpush3.bf16.xpose.msra.mxu0 %v644_v50  ;;  %v645_v6 = vpack.c.bf16 %v631_v57, %v630_v56  ;;  %v1293_v19 = vpop.eup %1292  ;;  %v633_v21 = vadd.f32 %v617_v9, %v553_v7  ;;  %v571_v23 = vsub.f32 1.0, %v1291_v11  ;;  %1302 = vpow2.f32 %v482_v12  ;;  %v1114_v50 = vld [vmem:[#allocation10 + $0x28] sm:$0xff]  }
  0xcf   : > { %1135 = vmatprep.subr.bf16.mxu0 %v1540_v5  ;;  %v1295_v24 = vpop.eup %1294  ;;  %1304 = vrcp.f32 %v494_v15  ;;  %v554_v26 = vmul.f32 %v1287_v62, %v1053_v13  ;;  %v555_v31 = vmul.f32 %v1291_v11, %v1054_v14  ;;  %v618_v32 = vmul.f32 %v1085_v16, %v570_v22  ;;  %v1122_v11 = vld [vmem:[#allocation12 + $0x30] sm:$0xff]  }
  0xd0   : > { %v1297_v25 = vpop.eup %1296  ;;  %1306 = vrcp.f32 %v495_v18  ;;  %v646_v30 = vpack.c.bf16 %v633_v21, %v632_v20  ;;  %v619_v33 = vmul.f32 %v1086_v17, %v571_v23  ;;  %v1057_v34 = vunpack.c.l.bf16 %v1113_v27 }
  0xd1   : > { %v1299_v29 = vpop.eup %1298  ;;  %v1058_v35 = vunpack.c.h.bf16 %v1113_v27  ;;  %v496_v37 = vadd.f32 1.0, %v1297_v25  ;;  %v572_v38 = vsub.f32 1.0, %v1293_v19  ;;  %v573_v39 = vsub.f32 1.0, %v1295_v24  ;;  %v1116_v27 = vld [vmem:[#allocation10 + $0x38] sm:$0xff]  }
  0xd2   : > { %v1090_v40 = vunpack.c.h.bf16 %v1120_v28  ;;  %v497_v41 = vadd.f32 1.0, %v1299_v29  ;;  %v634_v42 = vadd.f32 %v618_v32, %v554_v26  ;;  %v635_v43 = vadd.f32 %v619_v33, %v555_v31  ;;  %v1123_v28 = vld [vmem:[#allocation12 + $0x38] sm:$0xff]  }
  0xd3   : > { %v556_v45 = vmul.f32 %v1293_v19, %v1057_v34  ;;  %1308 = vrcp.f32 %v496_v37  ;;  %v557_v47 = vmul.f32 %v1295_v24, %v1058_v35  ;;  %v620_v48 = vmul.f32 %v1089_v36, %v572_v38 }
  0xd4   : > { %v621_v49 = vmul.f32 %v1090_v40, %v573_v39  ;;  %1310 = vrcp.f32 %v497_v41  ;;  %v647_v52 = vpack.c.bf16 %v635_v43, %v634_v42  ;;  %v1061_v55 = vunpack.c.l.bf16 %v1114_v50 }
  0xd5   : > { %v636_v57 = vadd.f32 %v620_v48, %v556_v45  ;;  %v1062_v59 = vunpack.c.h.bf16 %v1114_v50  ;;  %v1093_v63 = vunpack.c.l.bf16 %v1121_v54  ;;  %v1094_v0 = vunpack.c.h.bf16 %v1121_v54 }
  0xd6   : > { %1136 = vmatpush3.bf16.xpose.msra.mxu0 %v645_v6  ;;  %v637_v58 = vadd.f32 %v621_v49, %v557_v47  ;;  %v1065_v13 = vunpack.c.l.bf16 %v1115_v10  ;;  %v1066_v14 = vunpack.c.h.bf16 %v1115_v10  ;;  %v1097_v15 = vunpack.c.l.bf16 %v1122_v11 }
  0xd7   : > { %1137 = vmatprep.subr.bf16.mxu0 %v1540_v5  ;;  %v1301_v44 = vpop.eup %1300  ;;  %v1098_v16 = vunpack.c.h.bf16 %v1122_v11  ;;  %v1070_v31 = vunpack.c.h.bf16 %v1116_v27  ;;  %v1101_v32 = vunpack.c.l.bf16 %v1123_v28  ;;  %v1102_v33 = vunpack.c.h.bf16 %v1123_v28 }
  0xd8   : > { %v1303_v46 = vpop.eup %1302  ;;  %v498_v56 = vadd.f32 1.0, %v1301_v44  ;;  %v648_v1 = vpack.c.bf16 %v637_v58, %v636_v57  ;;  %v705_v47 = vand.u32 2147483647, %v1771_v2  ;;  %v714_v58 = vld [vmem:[#allocation2 + $0x8] sm:$0xff]  ;;  %v758_v10 = vmax.f32 %v1771_v2, 0.0 }
  0xd9   : > { %v1305_v51 = vpop.eup %1304  ;;  %v499_v60 = vadd.f32 1.0, %v1303_v46  ;;  %v1251_v46 = vld [vmem:[#allocation7] sm:$0xff]  }
  0xda   : > { %v1307_v53 = vpop.eup %1306  ;;  %v574_v61 = vsub.f32 1.0, %v1305_v51  ;;  %1312 = vrcp.f32 %v498_v56  ;;  %v558_v6 = vmul.f32 %v1305_v51, %v1061_v55  ;;  %v706_v51 = vand.u32 2147483647, %v1773_v3 }
  0xdb   : > { %v575_v62 = vsub.f32 1.0, %v1307_v53  ;;  %1314 = vrcp.f32 %v499_v60  ;;  %v559_v7 = vmul.f32 %v1307_v53, %v1062_v59  ;;  %v1542_v55 = vmov 0  }
  0xdc   : > { %v622_v8 = vmul.f32 %v1093_v63, %v574_v61  ;;  %1249 = vset.pattern.permute.xlu1 %v1542_v55  ;;  %1250 = vset.pattern.permute.xlu0 %v1542_v55 }
  0xdd   : > { %v1309_v4 = vpop.eup %1308  ;;  %v623_v9 = vmul.f32 %v1094_v0, %v575_v62 }
  0xde   : > { %1138 = vmatpush3.bf16.xpose.msra.mxu0 %v646_v30  ;;  %v1311_v12 = vpop.eup %1310  ;;  %v638_v17 = vadd.f32 %v622_v8, %v558_v6  ;;  %v576_v19 = vsub.f32 1.0, %v1309_v4  ;;  %v560_v21 = vmul.f32 %v1309_v4, %v1065_v13  ;;  %v1069_v30 = vunpack.c.l.bf16 %v1116_v27 }
  0xdf   : > { %1139 = vmatprep.subr.bf16.mxu0 %v1540_v5  ;;  %v639_v18 = vadd.f32 %v623_v9, %v559_v7  ;;  %v577_v20 = vsub.f32 1.0, %v1311_v12  ;;  %v561_v24 = vmul.f32 %v1311_v12, %v1066_v14  ;;  %v759_v13 = vmax.f32 %v1773_v3, 0.0 }
  0xe0   : > { %v624_v25 = vmul.f32 %v1097_v15, %v576_v19 }
  0xe1   : > { %v649_v23 = vpack.c.bf16 %v639_v18, %v638_v17  ;;  %v625_v26 = vmul.f32 %v1098_v16, %v577_v20  ;;  %v723_v17 = vld [vmem:[#allocation3] sm:$0xff] }
  0xe2   : > { %v640_v34 = vadd.f32 %v624_v25, %v560_v21  ;;  %v724_v21 = vld [vmem:[#allocation3 + $0x8] sm:$0xff] }
  0xe3   : > { %v641_v35 = vadd.f32 %v625_v26, %v561_v24 }
  0xe4   : > { %v1313_v22 = vpop.eup %1312 }
  0xe5   : > { %v1315_v29 = vpop.eup %1314  ;;  %v578_v36 = vsub.f32 1.0, %v1313_v22  ;;  %v562_v38 = vmul.f32 %v1313_v22, %v1069_v30  ;;  %v650_v39 = vpack.c.bf16 %v641_v35, %v640_v34 }
  0xe6   : > { %1140 = vmatpush3.bf16.xpose.msra.mxu0 %v647_v52  ;;  %v579_v37 = vsub.f32 1.0, %v1315_v29  ;;  %v563_v40 = vmul.f32 %v1315_v29, %v1070_v31  ;;  %v757_v29 = vld [vmem:[#allocation5 + $0x8] sm:$0xff] }
  0xe7   : > { %1141 = vmatprep.subr.bf16.mxu0 %v1540_v5  ;;  %v626_v41 = vmul.f32 %v1101_v32, %v578_v36 }
  0xe8   : > { %v627_v42 = vmul.f32 %v1102_v33, %v579_v37 }
  0xe9   : > { %v642_v43 = vadd.f32 %v626_v41, %v562_v38 }
  0xea   : > { %v643_v44 = vadd.f32 %v627_v42, %v563_v40 }
  0xec   : > { %v651_v45 = vpack.c.bf16 %v643_v44, %v642_v43 }
  0xee   : > { %1142 = vmatpush3.bf16.xpose.msra.mxu0 %v648_v1 }
  0xef   : > { %1143 = vmatprep.subr.bf16.mxu0 %v1540_v5 }
  0xf6   : > { %1144 = vmatpush3.bf16.xpose.msra.mxu0 %v649_v23  ;;  %v756_v23 = vld [vmem:[#allocation5] sm:$0xff] }
  0xf7   : > { %1145 = vmatprep.subr.bf16.mxu0 %v1540_v5 }
  0xfe   : > { %1146 = vmatpush3.bf16.xpose.msra.mxu0 %v650_v39 }
  0xff   : > { %1147 = vmatprep.subr.bf16.mxu0 %v1540_v5  ;;  %v713_v5 = vld [vmem:[#allocation2] sm:$0xff] }
 0x106   : > { %1148 = vmatpush3.bf16.xpose.msra.mxu0 %v651_v45 }
 0x10d   : > { %1150 = vmatmul.mubr.bf16.vlgmr.msra.gmra.mrb[0].mxu0 %v1251_v46 }
 0x1e0   : > { %v694_v48 = vpop.f32.mrb[0].mxu0 }
 0x1e1   : > { %703 = vst [vmem:[#allocation6] sm:$0xff] %v694_v48  ;;  %v1151_v49 = vpop.f32.mrb[1].mxu0  ;;  %v707_v50 = vmul.f32 %v705_v47, %v694_v48 }
 0x1e2   : > { %v697_v52 = vpop.f32.mrb[2].mxu0 }
 0x1e3   : > { %704 = vst [vmem:[#allocation6 + $0x8] sm:$0xff] %v697_v52  ;;  %709 = vmax.xlane.f32.xlu0 %v707_v50  ;;  %v1152_v53 = vpop.f32.mrb[3].mxu0  ;;  %v708_v54 = vmul.f32 %v706_v51, %v697_v52 }
 0x1e7   : > { %711 = vmax.xlane.f32.xlu0 %v708_v54 }
 0x270   : > { %v710_v56 = vpop.xlane.xlu0 %709 }
 0x271   : > { %v715_v57 = vmax.f32 %v713_v5, %v710_v56 }
 0x273   : > { %v717_v59 = vsub.f32 %v713_v5, %v715_v57  ;;  %754 = vst.msk [vmem:[#allocation2] sm:$0xff] %vm751_vm2, %v715_v57  ;;  %729 = vperm.xlu1 %1249, %v715_v57  }
 0x274   : > { %v712_v60 = vpop.xlane.xlu0 %711 }
 0x275   : > { %v716_v61 = vmax.f32 %v714_v58, %v712_v60  ;;  %v719_v14 = vmul.f32 1.442695, %v717_v59 }
 0x277   : > { %v718_v62 = vsub.f32 %v714_v58, %v716_v61  ;;  %755 = vst.msk [vmem:[#allocation2 + $0x8] sm:$0xff] %vm751_vm2, %v716_v61  ;;  %734 = vperm.xlu1 %1249, %v716_v61  }
 0x279   : > { %v721_v15 = vmul.f32 1.442695, %v718_v62 }
 0x2f2   : > { %v730_v63 = vpop.permute.xlu1 %729 }
 0x2f3   : > { %v737_v0 = vsub.f32 %v694_v48, %v730_v63 }
 0x2f5   : > { %v739_v1 = vmul.f32 1.442695, %v737_v0 }
 0x2f6   : > { %v735_v4 = vpop.permute.xlu1 %734 }
 0x2f7   : > { %1316 = vpow2.f32 %v739_v1  ;;  %v738_v6 = vsub.f32 %v697_v52, %v735_v4 }
 0x2f9   : > { %v741_v7 = vmul.f32 1.442695, %v738_v6 }
 0x2fb   : > { %1318 = vpow2.f32 %v741_v7 }
 0x2fc   : > { %1320 = vpow2.f32 %v719_v14 }
 0x2fd   : > { %1322 = vpow2.f32 %v721_v15 }
 0x301   : > { %v1317_v8 = vpop.eup %1316 }
 0x302   : > { %v743_v9 = vmul.f32 %v1317_v8, %v705_v47 }
 0x304   : > { %745 = vadd.xlane.f32.xlu0 %v743_v9 }
 0x305   : > { %v1319_v11 = vpop.eup %1318 }
 0x306   : > { %v744_v12 = vmul.f32 %v1319_v11, %v706_v51  ;;  %v1321_v16 = vpop.eup %1320 }
 0x307   : > { %v725_v18 = vmul.f32 %v1321_v16, %v723_v17  ;;  %v1323_v19 = vpop.eup %1322 }
 0x308   : > { %760 = vadd.xlane.f32.xlu0 %v758_v10  ;;  %747 = vadd.xlane.f32.xlu1 %v744_v12  ;;  %v726_v24 = vmul.f32 %v1323_v19, %v724_v21 }
 0x30c   : > { %762 = vadd.xlane.f32.xlu0 %v759_v13 }
 0x391   : > { %v746_v20 = vpop.xlane.xlu0 %745 }
 0x392   : > { %v749_v22 = vadd.f32 %v746_v20, %v725_v18 }
 0x394   : > { %752 = vst.msk [vmem:[#allocation3] sm:$0xff] %vm751_vm2, %v749_v22 }
 0x395   : > { %v748_v25 = vpop.xlane.xlu1 %747  ;;  %v761_v26 = vpop.xlane.xlu0 %760 }
 0x396   : > { %v750_v27 = vadd.f32 %v748_v25, %v726_v24  ;;  %v764_v28 = vadd.f32 %v761_v26, %v756_v23 }
 0x398   : > { %753 = vst.msk [vmem:[#allocation3 + $0x8] sm:$0xff] %vm751_vm2, %v750_v27  ;;  %766 = vst.msk [vmem:[#allocation5] sm:$0xff] %vm751_vm2, %v764_v28 }
 0x399   : > { %v763_v30 = vpop.xlane.xlu0 %762 }
 0x39a   : > { %v765_v31 = vadd.f32 %v763_v30, %v757_v29 }
 0x39c   : > { %767 = vst.msk [vmem:[#allocation5 + $0x8] sm:$0xff] %vm751_vm2, %v765_v31 }
 0x39d PF: > { %p768_p10 = scmp.eq.s32.totalorder %s1519_s18, 1  ;;  %p999_p11 = scmp.ne.s32.totalorder %s1519_s18, 1 }
 0x39e   : > { %v780_v32 = vld [vmem:[#allocation3] sm:$0xff] (!%p999_p11)  ;;  %v1543_v33 = vmov (!%p999_p11), 0   ;;  %v778_v36 = vld [vmem:[#allocation2] sm:$0xff] (!%p999_p11)  ;;  %v779_v39 = vld [vmem:[#allocation2 + $0x8] sm:$0xff] (!%p999_p11)  ;;  %v776_v48 = vmax.f32 (!%p999_p11), %v1771_v2, 0.0  ;;  %v777_v54 = vmax.f32 (!%p999_p11), %v1773_v3, 0.0 }
 0x39f   : > { %771 = sbr.rel (%p999_p11) target bundleno = 1227 (0x4cb), region = 72  ;;  %1324 = vset.pattern.permute.xlu0 (!%p999_p11), %v1543_v33  ;;  %1325 = vlog2.f32 (!%p999_p11), %v780_v32  ;;  %v781_v34 = vld [vmem:[#allocation3 + $0x8] sm:$0xff] (!%p999_p11)  ;;  %v774_v43 = vld [vmem:[#allocation6] sm:$0xff] (!%p999_p11)  ;;  %v775_v46 = vld [vmem:[#allocation6 + $0x8] sm:$0xff] (!%p999_p11)  ;;  %vm814_vm3 = vcmask (!%p999_p11), 7168  }
 0x3a0   : > { %1327 = vlog2.f32 (!%p999_p11), %v781_v34  ;;  %v804_v56 = vld [vmem:[#allocation4] sm:$0xff] (!%p999_p11)  ;;  %v805_v59 = vld [vmem:[#allocation4 + $0x8] sm:$0xff] (!%p999_p11) }
 0x3a9   : > { %v1326_v35 = vpop.eup %1325 }
 0x3aa   : > { %v1328_v37 = vpop.eup %1327  ;;  %v783_v38 = vmul.f32 0.6931472, %v1326_v35 }
 0x3ab   : > { %v785_v40 = vmul.f32 0.6931472, %v1328_v37 }
 0x3ac   : > { %v786_v41 = vadd.f32 %v783_v38, %v778_v36 }
 0x3ad   : > { %v787_v42 = vadd.f32 %v785_v40, %v779_v39 }
 0x3ae   : > { %790 = vperm.xlu0 %1324, %v786_v41  }
 0x3b2   : > { %795 = vperm.xlu0 %1324, %v787_v42  }
 0x42d   : > { %v791_v44 = vpop.permute.xlu0 %790 }
 0x42e   : > { %v798_v45 = vsub.f32 %v774_v43, %v791_v44 }
 0x430   : > { %v800_v47 = vmax.f32 %v798_v45, -23.02585 }
 0x431   : > { %v796_v49 = vpop.permute.xlu0 %795 }
 0x432   : > { %v802_v50 = vmin.f32 %v800_v47, 0.0  ;;  %v799_v51 = vsub.f32 %v775_v46, %v796_v49 }
 0x434   : > { %v801_v52 = vmax.f32 %v799_v51, -23.02585  ;;  %v806_v53 = vmul.f32 %v802_v50, %v776_v48 }
 0x436   : > { %v803_v55 = vmin.f32 %v801_v52, 0.0  ;;  %808 = vadd.xlane.f32.xlu1 %v806_v53 }
 0x438   : > { %v807_v5 = vmul.f32 %v803_v55, %v777_v54 }
 0x43a   : > { %810 = vadd.xlane.f32.xlu1 %v807_v5 }
 0x4c3   : > { %v809_v57 = vpop.xlane.xlu1 %808 }
 0x4c4   : > { %v812_v58 = vadd.f32 %v809_v57, %v804_v56 }
 0x4c6   : > { %815 = vst.msk [vmem:[#allocation4] sm:$0xff] %vm814_vm3, %v812_v58 }
 0x4c7   : > { %v811_v60 = vpop.xlane.xlu1 %810 }
 0x4c8   : > { %v813_v61 = vadd.f32 %v811_v60, %v805_v59 }
 0x4ca   : > { %816 = vst.msk [vmem:[#allocation4 + $0x8] sm:$0xff] %vm814_vm3, %v813_v61 }
 0x4cb PF: > { %820 = sbr.rel (!%p768_p10) target bundleno = 1454 (0x5ae), region = 76  ;;  %v821_v2 = vld [vmem:[#allocation5] sm:$0xff] (%p768_p10)  ;;  %v822_v62 = vld [vmem:[#allocation5 + $0x8] sm:$0xff] (%p768_p10)  ;;  %vm831_vm4 = vcmask (%p768_p10), 7168  }
 0x4cc   : > { %v823_v3 = vmax.f32 (%p768_p10), %v821_v2, 1.0  ;;  %v824_v63 = vmax.f32 (%p768_p10), %v822_v62, 1.0 }
 0x4cd   : > { %v827_v0 = vld [vmem:[#allocation4] sm:$0xff] (%p768_p10) }
 0x4ce   : > { %1329 = vrcp.f32 (%p768_p10), %v823_v3 }
 0x4cf   : > { %1331 = vrcp.f32 (%p768_p10), %v824_v63 }
 0x4d1   : > { %v828_v1 = vld [vmem:[#allocation4 + $0x8] sm:$0xff] (%p768_p10) }
 0x4d8   : > { %v1330_v4 = vpop.eup %1329 }
 0x4d9   : > { %v1332_v6 = vpop.eup %1331  ;;  %v829_v7 = vmul.f32 %v1330_v4, %v827_v0 }
 0x4da   : > { %v830_v8 = vmul.f32 %v1332_v6, %v828_v1 }
 0x4db   : > { %v832_v9 = vsel %vm831_vm4, %v829_v7, 0.0 }
 0x4dc   : > { %v833_v10 = vsel %vm831_vm4, %v830_v8, 0.0 }
 0x4dd   : > { %v834_v11 = vadd.f32 %v833_v10, %v832_v9 }
 0x4df   : > { %835 = vadd.xlane.f32.xlu0 %v834_v11 }
 0x56c   : > { %v836_v12 = vpop.xlane.xlu0 %835 }
 0x56d   : > { %v837_v13 = vrot.slane %v836_v12, 4 }
 0x56f   : > { %v838_v14 = vadd.f32 %v837_v13, %v836_v12 }
 0x571   : > { %v839_v15 = vrot.slane %v838_v14, 2 }
 0x573   : > { %v840_v16 = vadd.f32 %v839_v15, %v838_v14 }
 0x575   : > { %v841_v17 = vrot.slane %v840_v16, 1 }
 0x577   : > { %v842_v18 = vadd.f32 %v841_v17, %v840_v16 }
 0x579   : > { %1153 = vpush %v842_v18 }
 0x5aa   : > { %s1154_s18 = spop %1153 }
 0x5ab   : > { %s844_s24 = ssub.f32 0.0, %s1154_s18 }
 0x5ad   : > { %846 = sst [smem:[#allocation16]] %s844_s24 }
 0x5ae PF: > { %p1207_p2 = scmp.eq.s32.totalorder %s1591_s23, 1  ;;  %s1473_s21 = scalar_lea.hbm %s1828_s5, 16 }
 0x5af   : > { %p1474_p12 = scmp.ne.s32.totalorder %s1828_s5, %s1473_s21  ;;  %p1479_p7 = scmp.lt.u32.totalorder %s1473_s21, %s1828_s5 }
 0x5b1   : > { %p1475_p6 = pnand %p1474_p12, %p1207_p2 }
 0x5b3   : > { %p1476_p9 = pneg %p1475_p6 }
 0x5b5   : > { %p1481_p5 = pnand %p1479_p7, %p1476_p9 }
 0x5b7   : > { %1484 = shalt.err (!%p1481_p5)
}
 0x5b8   : > { %s1544_s8 = smov [#allocation16]  }
 0x5b9   : > { %1176 = dma.smem_to_hbm (%p1207_p2), %s1544_s8, 16, %s1828_s5, [#allocation9]  }
 0x5ba   : > { %1514 = dma.done.wait (%p1207_p2), [#allocation9], 16  }
 0x5bb   : > { %1516 = vsyncadd (%p1207_p2), [#allocation9], 4294967280 }
 0x5bc   : > { %860 = sfence }
 0x5bd PF: > { %s23_s20 = sadd.s32 1, %s1527_s20   ;;  %s1857_s18 = smov %s1523_s19 }
 0x5be   : > { %p20_p3 = scmp.ge.s32.totalorder %s23_s20, 4   ;;  %s1858_s19 = smov %s1860_s15 }
 0x5c0   :  { %22 = sbr.rel (!%p20_p3) target bundleno = 7 (0x7), region = 130 }
 0x5c7   :  { %866 = vsyncpa [#allocation8], 1 }
 0x5c8   :  { %868 = vsyncpa [#allocation8 + $0x1], 1 }
 0x5c9   :  { %869 = vsyncpa [#allocation11], 1 }
 0x5ca   :  { %871 = vsyncpa [#allocation11 + $0x1], 1 }
 0x5cb   :  { %872 = vsyncpa [#allocation14], 1 }
 0x5cc   :  { %874 = vsyncpa [#allocation14 + $0x1], 1 }
 0x5cd   :  { %875 = vsyncpa [#allocation9], 1 }
 0x5ce   :  { %877 = vsyncpa [#allocation9 + $0x1], 1 }

</bundles_post_ra>
